<compile_context>
chip_gen: v7x
topology: tpu7x:2x2x1
jax: 0.10.0
libtpu: 0.0.40
codegen_flags: <defaults>
</compile_context>

<pallas_src>
import functools

import jax
import jax.numpy as jnp
from jax import lax
from jax.experimental import pallas as pl
from jax.experimental.pallas import tpu as pltpu

_NORM_EPS = 1e-12      # F.normalize default eps (clamp on the L2 norm)
_LOG_CLAMP = -100.0    # F.binary_cross_entropy clamps log() at -100
_NUM_CORES = 2         # leading "parallel" grid axis (both TCs on v7x)


def _round_up(x, m):
    return (x + m - 1) // m * m


def _info_nce_kernel(v_ref, y_ref, o_ref, acc_ref, *, inv_temp, inv_total,
                     d_true, b_true, b_pad, bn, blocks_per_core):
    c = pl.program_id(0)          # core / outer-parallel axis
    i = pl.program_id(1)          # row-block axis (reduction, "arbitrary")

    @pl.when(i == 0)
    def _init():
        acc_ref[...] = jnp.zeros_like(acc_ref)

    v = v_ref[...].astype(jnp.float32)          # (bn, Dp)
    y = y_ref[...].astype(jnp.float32)          # (bn, Dp)
    d_pad = v.shape[-1]

    # L2-normalize along the last dim; 1/temperature folded into the scale.
    # Padded lanes hold zeros, so they do not perturb the norm.
    sq = jnp.sum(v * v, axis=-1, keepdims=True)                    # (bn, 1)
    scale = inv_temp * lax.rsqrt(jnp.maximum(sq, _NORM_EPS * _NORM_EPS))
    logits = v * scale                                             # (bn, Dp)

    lane_valid = None
    if d_pad != d_true:        # static: only emit lane masking when D padded
        lane = lax.broadcasted_iota(jnp.int32, logits.shape, 1)
        lane_valid = lane < d_true
        logits = jnp.where(lane_valid, logits, jnp.float32(-1e30))

    # Numerically stable softmax; keep the shifted logits for log-softmax.
    m = jnp.max(logits, axis=-1, keepdims=True)
    shifted = logits - m
    e = jnp.exp(shifted)
    row_sum = jnp.sum(e, axis=-1, keepdims=True)                   # (bn, 1)
    inv_sum = 1.0 / row_sum           # exact per-row reciprocal (feeds log(1-p))
    p = e * inv_sum

    # BCE with PyTorch's log clamp at -100.  log(p) via log-softmax (one
    # per-row log instead of a full-width log).
    log_p = jnp.maximum(shifted - jnp.log(row_sum), _LOG_CLAMP)
    log_1mp = jnp.maximum(jnp.log(1.0 - p), _LOG_CLAMP)
    bce = -(y * log_p + (1.0 - y) * log_1mp)

    if d_pad != d_true:
        bce = jnp.where(lane_valid, bce, 0.0)
    if b_pad != b_true:        # static: only emit row masking when B padded
        row = lax.broadcasted_iota(jnp.int32, bce.shape, 0)
        global_row = (c * blocks_per_core + i) * bn + row
        bce = jnp.where(global_row < b_true, bce, 0.0)

    # Lane-dense vector accumulation: one VPU add per step, no per-step
    # cross-lane reduce, no SMEM round trip.
    acc_ref[...] += bce

    @pl.when(i == pl.num_programs(1) - 1)
    def _finalize():
        partial = jnp.sum(acc_ref[...]) * inv_total
        # Lane-dense (1, 8, 128) broadcast store of this core's partial.
        o_ref[...] = jnp.full(o_ref.shape, partial, dtype=o_ref.dtype)


def _pick_block_rows(batch, dim_padded, bytes_target=2 << 20):
    """Sublane-aligned row count whose (bn, dim_padded) f32 block stays under
    bytes_target (2 inputs x 2 pipeline buffers fits every scoped-VMEM
    default, including v5e's 16 MiB and v7x's 64 MiB physical)."""
    cap = max(8, (bytes_target // (dim_padded * 4)) // 8 * 8)
    return min(_round_up(batch, 8), cap)


def info_nce_loss(values, labels, temperature=0.01, block_rows=None):
    """values, labels: (B, D) float -> scalar f32 loss (InfoNCE.forward)."""
    B, D = values.shape
    assert labels.shape == (B, D)

    d_pad = _round_up(D, 128)
    bn = _pick_block_rows(B, d_pad) if block_rows is None else block_rows
    assert bn % 8 == 0, bn

    nblocks = _round_up(pl.cdiv(B, bn), _NUM_CORES)
    blocks_per_core = nblocks // _NUM_CORES
    b_pad = nblocks * bn

    if (b_pad, d_pad) != (B, D):
        pad = ((0, b_pad - B), (0, d_pad - D))
        values = jnp.pad(values, pad)
        labels = jnp.pad(labels, pad)

    kernel = functools.partial(
        _info_nce_kernel,
        inv_temp=float(1.0 / temperature),
        inv_total=float(1.0 / (B * D)),
        d_true=D, b_true=B, b_pad=b_pad, bn=bn,
        blocks_per_core=blocks_per_core,
    )

    # Explicit VMEM budget: 2 inputs x 2 pipeline buffers + accumulator + out.
    block_in_bytes = bn * d_pad * values.dtype.itemsize
    acc_bytes = bn * d_pad * 4
    vmem_limit = max(16 << 20, 2 * 2 * block_in_bytes + acc_bytes + (2 << 20))

    in_map = lambda c, i: (c * blocks_per_core + i, 0)

    out = pl.pallas_call(
        kernel,
        out_shape=jax.ShapeDtypeStruct((_NUM_CORES, 8, 128), jnp.float32),
        grid_spec=pltpu.PrefetchScalarGridSpec(
            num_scalar_prefetch=0,
            grid=(_NUM_CORES, blocks_per_core),
            in_specs=[
                pl.BlockSpec((bn, d_pad), in_map),     # values block
                pl.BlockSpec((bn, d_pad), in_map),     # labels block
            ],
            out_specs=pl.BlockSpec((1, 8, 128), lambda c, i: (c, 0, 0)),
            scratch_shapes=[pltpu.VMEM((bn, d_pad), jnp.float32)],
        ),
        compiler_params=pltpu.CompilerParams(
            dimension_semantics=("parallel", "arbitrary"),
            vmem_limit_bytes=int(vmem_limit)),
    )(values, labels)

    # Sum the per-core partials (each already scaled by 1/(B*D)).
    return jnp.sum(out[:, 0, 0])


def _reference(values, labels, temperature=0.01):
    """Pure-JAX mirror of the PyTorch module (f32)."""
    norm = jnp.maximum(
        jnp.sqrt(jnp.sum(values * values, axis=-1, keepdims=True)), _NORM_EPS)
    logits = values / norm / temperature
    p = jax.nn.softmax(logits, axis=-1)
    log_p = jnp.maximum(jnp.log(p), _LOG_CLAMP)
    log_1mp = jnp.maximum(jnp.log(1.0 - p), _LOG_CLAMP)
    bce = -(labels * log_p + (1.0 - labels) * log_1mp)
    return jnp.mean(bce)


if __name__ == "__main__":
    key = jax.random.PRNGKey(0)
    kv, kl, kv2, kl2 = jax.random.split(key, 4)

    # Aligned case (D multiple of 128, B multiple of 8).
    B, D = 16, 128
    values = jax.random.normal(kv, (B, D), dtype=jnp.float32)
    labels = jax.random.uniform(kl, (B, D), dtype=jnp.float32)   # BCE targets

    loss = info_nce_loss(values, labels, temperature=0.01, block_rows=8)
    loss = jax.block_until_ready(loss)
    ref = jax.block_until_ready(_reference(values, labels, 0.01))
    assert loss.shape == ()
    # Loose atol: with temperature=0.01 the clamp at log(1-p) is a knife edge
    # when p rounds to 1.0 in f32; a single flipped element shifts the mean
    # by ~0.04 and is legitimate f32 behaviour (PyTorch f32 has the same).
    assert jnp.allclose(loss, ref, atol=5e-2, rtol=1e-3), (loss, ref)

    # Ragged case: exercises B/D padding + in-kernel row/lane masking.
    B2, D2 = 13, 100
    values2 = jax.random.normal(kv2, (B2, D2), dtype=jnp.float32)
    labels2 = jax.random.uniform(kl2, (B2, D2), dtype=jnp.float32)
    loss2 = jax.block_until_ready(info_nce_loss(values2, labels2, 0.01))
    ref2 = jax.block_until_ready(_reference(values2, labels2, 0.01))
    assert loss2.shape == ()
    assert jnp.allclose(loss2, ref2, atol=5e-2, rtol=1e-3), (loss2, ref2)

    print("KERNEL_OK")
</pallas_src>

<mosaic_0001>
module attributes {stable_mosaic.version = 11 : i64} {
  func.func @_info_nce_kernel(%arg0: i32, %arg1: i32, %arg2: memref<8x128xf32, #tpu.memory_space<vmem>>, %arg3: memref<8x128xf32, #tpu.memory_space<vmem>>, %arg4: memref<1x8x128xf32, #tpu.memory_space<vmem>>, %arg5: memref<8x128xf32, #tpu.memory_space<vmem>>) attributes {dimension_semantics = [#tpu.dimension_semantics<parallel>, #tpu.dimension_semantics<arbitrary>], iteration_bounds = array<i64: 2, 1>, scalar_prefetch = 0 : i64, scratch_operands = 1 : i64, tpu.core_type = #tpu.core_type<tc>, window_params = [{transform_indices = @transform_0, window_bounds = array<i64: 8, 128>}, {transform_indices = @transform_1, window_bounds = array<i64: 8, 128>}, {transform_indices = @transform_2, window_bounds = array<i64: 1, 8, 128>}]} {
    %c0_i32 = arith.constant 0 : i32
    %0 = arith.cmpi eq, %arg1, %c0_i32 : i32
    %1 = arith.extui %0 : i1 to i32
    %c0_i32_0 = arith.constant 0 : i32
    %2 = arith.cmpi ne, %1, %c0_i32_0 : i32
    scf.if %2 {
      %cst_20 = arith.constant 0.000000e+00 : f32
      %49 = vector.broadcast %cst_20 : f32 to vector<8x128xf32>
      %c0_21 = arith.constant 0 : index
      %c0_22 = arith.constant 0 : index
      %50 = vector.load %arg5[%c0_21, %c0_22] : memref<8x128xf32, #tpu.memory_space<vmem>>, vector<8x128xf32>
      tpu.vector_store %arg5[%c0_21, %c0_22], %49 {strides = array<i32>} : memref<8x128xf32, #tpu.memory_space<vmem>>, vector<8x128xf32>,
    } else {
    }
    %c0 = arith.constant 0 : index
    %c0_1 = arith.constant 0 : index
    %3 = vector.load %arg2[%c0, %c0_1] : memref<8x128xf32, #tpu.memory_space<vmem>>, vector<8x128xf32>
    %c0_2 = arith.constant 0 : index
    %c0_3 = arith.constant 0 : index
    %4 = vector.load %arg3[%c0_2, %c0_3] : memref<8x128xf32, #tpu.memory_space<vmem>>, vector<8x128xf32>
    %5 = arith.mulf %3, %3 : vector<8x128xf32>
    %cst = arith.constant dense<0.000000e+00> : vector<8xf32>
    %6 = vector.multi_reduction <add>, %5, %cst [1] : vector<8x128xf32> to vector<8xf32>
    %7 = vector.shape_cast %6 : vector<8xf32> to vector<8x1xf32>
    %cst_4 = arith.constant 1.000000e-24 : f32
    %8 = vector.broadcast %cst_4 : f32 to vector<8x1xf32>
    %9 = arith.maximumf %7, %8 : vector<8x1xf32>
    %10 = math.rsqrt %9 : vector<8x1xf32>
    %cst_5 = arith.constant 1.000000e+02 : f32
    %11 = vector.broadcast %cst_5 : f32 to vector<8x1xf32>
    %12 = arith.mulf %11, %10 : vector<8x1xf32>
    %13 = vector.broadcast %12 : vector<8x1xf32> to vector<8x128xf32>
    %14 = arith.mulf %3, %13 : vector<8x128xf32>
    %cst_6 = arith.constant dense<0xFF800000> : vector<8xf32>
    %15 = vector.multi_reduction <maximumf>, %14, %cst_6 [1] : vector<8x128xf32> to vector<8xf32>
    %16 = vector.shape_cast %15 : vector<8xf32> to vector<8x1xf32>
    %17 = vector.broadcast %16 : vector<8x1xf32> to vector<8x128xf32>
    %18 = arith.subf %14, %17 : vector<8x128xf32>
    %19 = math.exp %18 : vector<8x128xf32>
    %cst_7 = arith.constant dense<0.000000e+00> : vector<8xf32>
    %20 = vector.multi_reduction <add>, %19, %cst_7 [1] : vector<8x128xf32> to vector<8xf32>
    %21 = vector.shape_cast %20 : vector<8xf32> to vector<8x1xf32>
    %cst_8 = arith.constant 1.000000e+00 : f32
    %22 = vector.broadcast %cst_8 : f32 to vector<8x1xf32>
    %23 = arith.divf %22, %21 : vector<8x1xf32>
    %24 = vector.broadcast %23 : vector<8x1xf32> to vector<8x128xf32>
    %25 = arith.mulf %19, %24 : vector<8x128xf32>
    %26 = math.log %21 : vector<8x1xf32>
    %27 = vector.broadcast %26 : vector<8x1xf32> to vector<8x128xf32>
    %28 = arith.subf %18, %27 : vector<8x128xf32>
    %cst_9 = arith.constant -1.000000e+02 : f32
    %29 = vector.broadcast %cst_9 : f32 to vector<8x128xf32>
    %30 = arith.maximumf %28, %29 : vector<8x128xf32>
    %cst_10 = arith.constant 1.000000e+00 : f32
    %31 = vector.broadcast %cst_10 : f32 to vector<8x128xf32>
    %32 = arith.subf %31, %25 : vector<8x128xf32>
    %33 = math.log %32 : vector<8x128xf32>
    %cst_11 = arith.constant -1.000000e+02 : f32
    %34 = vector.broadcast %cst_11 : f32 to vector<8x128xf32>
    %35 = arith.maximumf %33, %34 : vector<8x128xf32>
    %36 = arith.mulf %4, %30 : vector<8x128xf32>
    %cst_12 = arith.constant 1.000000e+00 : f32
    %37 = vector.broadcast %cst_12 : f32 to vector<8x128xf32>
    %38 = arith.subf %37, %4 : vector<8x128xf32>
    %39 = arith.mulf %38, %35 : vector<8x128xf32>
    %40 = arith.addf %36, %39 : vector<8x128xf32>
    %cst_13 = arith.constant 0.000000e+00 : f32
    %41 = vector.broadcast %cst_13 : f32 to vector<8x128xf32>
    %42 = arith.subf %41, %40 : vector<8x128xf32>
    %c0_14 = arith.constant 0 : index
    %c0_15 = arith.constant 0 : index
    %43 = vector.load %arg5[%c0_14, %c0_15] : memref<8x128xf32, #tpu.memory_space<vmem>>, vector<8x128xf32>
    %44 = arith.addf %43, %42 : vector<8x128xf32>
    %c0_16 = arith.constant 0 : index
    %c0_17 = arith.constant 0 : index
    %45 = vector.load %arg5[%c0_16, %c0_17] : memref<8x128xf32, #tpu.memory_space<vmem>>, vector<8x128xf32>
    tpu.vector_store %arg5[%c0_16, %c0_17], %44 {strides = array<i32>} : memref<8x128xf32, #tpu.memory_space<vmem>>, vector<8x128xf32>,
    %c0_i32_18 = arith.constant 0 : i32
    %46 = arith.cmpi eq, %arg1, %c0_i32_18 : i32
    %47 = arith.extui %46 : i1 to i32
    %c0_i32_19 = arith.constant 0 : i32
    %48 = arith.cmpi ne, %47, %c0_i32_19 : i32
    scf.if %48 {
      %c0_20 = arith.constant 0 : index
      %c0_21 = arith.constant 0 : index
      %49 = vector.load %arg5[%c0_20, %c0_21] : memref<8x128xf32, #tpu.memory_space<vmem>>, vector<8x128xf32>
      %50 = vector.shape_cast %49 : vector<8x128xf32> to vector<1x8x128xf32>
      %cst_22 = arith.constant dense<0.000000e+00> : vector<1xf32>
      %51 = vector.multi_reduction <add>, %50, %cst_22 [1, 2] : vector<1x8x128xf32> to vector<1xf32>
      %52 = vector.shape_cast %51 : vector<1xf32> to vector<1x1x1xf32>
      %53 = vector.extract %52[0, 0, 0] : f32 from vector<1x1x1xf32>
      %cst_23 = arith.constant 4.8828125E-4 : f32
      %54 = arith.mulf %53, %cst_23 : f32
      %55 = vector.broadcast %54 : f32 to vector<1x8x128xf32>
      %c0_24 = arith.constant 0 : index
      %c0_25 = arith.constant 0 : index
      %c0_26 = arith.constant 0 : index
      %56 = vector.load %arg4[%c0_24, %c0_25, %c0_26] : memref<1x8x128xf32, #tpu.memory_space<vmem>>, vector<1x8x128xf32>
      tpu.vector_store %arg4[%c0_24, %c0_25, %c0_26], %55 {strides = array<i32>} : memref<1x8x128xf32, #tpu.memory_space<vmem>>, vector<1x8x128xf32>,
    } else {
    }
    return
  }
  func.func @transform_0(%arg0: i32, %arg1: i32) -> (i32, i32) {
    %c1_i32 = arith.constant 1 : i32
    %0 = arith.muli %arg0, %c1_i32 : i32
    %1 = arith.addi %0, %arg1 : i32
    %c0_i32 = arith.constant 0 : i32
    %c0_i32_0 = arith.constant 0 : i32
    return %1, %c0_i32 : i32, i32
  }
  func.func @transform_1(%arg0: i32, %arg1: i32) -> (i32, i32) {
    %c1_i32 = arith.constant 1 : i32
    %0 = arith.muli %arg0, %c1_i32 : i32
    %1 = arith.addi %0, %arg1 : i32
    %c0_i32 = arith.constant 0 : i32
    %c0_i32_0 = arith.constant 0 : i32
    return %1, %c0_i32 : i32, i32
  }
  func.func @transform_2(%arg0: i32, %arg1: i32) -> (i32, i32, i32) {
    %c0_i32 = arith.constant 0 : i32
    %c0_i32_0 = arith.constant 0 : i32
    %c0_i32_1 = arith.constant 0 : i32
    return %arg0, %c0_i32, %c0_i32_0 : i32, i32, i32
  }
}

</mosaic_0001>

<bundles_post_ra>
// kernel: tpu_custom_call.1
= control target key start
LH: loop header
LB: loop body
LE: loop exit
PB: predicated region body
PF: predicated region fallthrough
CT: control target
= control target key end

     0   :  { %7 = vsyncpa [#allocation4], 0  ;;  %s875_s0 = inlined_call_operand.hbm [shape: f32[16,128], index: 0, kind: input, shape index: {}]   ;;  %s876_s1 = inlined_call_operand.hbm [shape: f32[16,128], index: 1, kind: input, shape index: {}]   ;;  %s877_s2 = inlined_call_operand.hbm [shape: f32[2,8,128], index: 2, kind: output, shape index: {}]  }
   0x1   :  { %9 = vsyncpa [#allocation4 + $0x1], 0 }
   0x2   :  { %10 = vsyncpa [#allocation7], 0 }
   0x3   :  { %12 = vsyncpa [#allocation7 + $0x1], 0 }
   0x4   :  { %13 = vsyncpa [#allocation5], 0 }
   0x5   :  { %15 = vsyncpa [#allocation5 + $0x1], 0  ;;  %s650_s9 = smov 0   ;;  %s652_s10 = smov 0  }
   0x6   :  { %s654_s11 = smov 0   ;;  %s656_s12 = smov 0  }
   0x7   :  { %s658_s13 = smov 0   ;;  %s660_s14 = smov 0  }
   0x8 LB: > { %s389_s15 = sadd.s32 4294967295, %s630_s14   ;;  %s390_s16 = sadd.s32 4294967294, %s630_s14   ;;  %s630_s14 = sphi %s660_s14, %s21_s14   ;;  %s626_s13 = sphi %s658_s13, %s897_s13   ;;  %s622_s12 = sphi %s656_s12, %s896_s12   ;;  %s618_s11 = sphi %s654_s11, %s895_s11   ;;  %s614_s10 = sphi %s652_s10, %s894_s10   ;;  %s610_s9 = sphi %s650_s9, %s893_s9  }
   0x9   : > { %s33_s17 = sadd.s32 1, %s626_s13  ;;  %s42_s18 = sadd.s32 1, %s618_s11 }
   0xa   : > { %p35_p0 = scmp.ge.s32.totalorder %s33_s17, 2  ;;  %p49_p1 = scmp.ne.s32.totalorder %s618_s11, %s614_s10 }
   0xb   : > { %p50_p2 = scmp.eq.s32.totalorder %s630_s14, 0  ;;  %p55_p3 = scmp.ne.s32.totalorder %s614_s10, %s610_s9 }
   0xc   : > { %s899_s17 = smov (%p35_p0, %s33_s17), 0  ;;  %p56_p5 = scmp.eq.s32.totalorder %s389_s15, 0 }
   0xd   : > { %p691_p4 = por %p50_p2, %p49_p1  ;;  %s39_s20 = ssub.s32 %s626_s13, %s899_s17 }
   0xe   : > { %p107_p6 = scmp.eq.s32.totalorder %s389_s15, 1  ;;  %p40_p7 = scmp.eq.s32.totalorder %s39_s20, 0 }
   0xf   : > { %p697_p8 = por %p56_p5, %p55_p3  ;;  %p113_p10 = scmp.eq.s32.totalorder %s390_s16, 1 }
  0x10   : > { %p701_p9 = por %p107_p6, %p49_p1  ;;  %p424_p13 = scmp.lt.s32.totalorder %s630_s14, 2 }
  0x11   : > { %s881_s21 = scalar_select %p697_p8, 1, 0 }
  0x12   : > { %s882_s22 = scalar_select %p701_p9, 1, 0 }
  0x13   : > { %s706_s23 = scalar_select %p40_p7, %s618_s11, %s42_s18  }
  0x14   : > { %p708_p11 = por %p113_p10, %p55_p3  ;;  %s715_s25 = sand.u32 1, %s618_s11  }
  0x15   : > { %s393_s26 = sshll.u32 %s715_s25, 3  ;;  %s394_s27 = sshll.u32 %s626_s13, 7 }
  0x16   : > { %s883_s24 = scalar_select %p708_p11, 1, 0 }
  0x17   : > { %s724_s30 = scalar_lea.hbm %s875_s0, %s394_s27  ;;  %s137_s3 = scalar_lea.vmem [#allocation3], %s393_s26 }
  0x18   : > { %s145_s4 = sshll.u32 %s137_s3, 4  ;;  %p732_p0 = pnand %p424_p13, %p691_p4  ;;  %s728_s4 = int_to_ptr.vmem [resolvable:$true] %s145_s4 }
  0x19   : > { %s134_s6 = scalar_lea.sflag [#allocation4], %s715_s25  ;;  %s484_s7 = scalar_lea.hbm %s724_s30, 128 }
  0x1a   : > { %p485_p3 = scmp.ne.s32.totalorder %s724_s30, %s484_s7  ;;  %p486_p5 = pneg %p732_p0 }
  0x1b   : > { %s489_s16 = scalar_lea.hbm %s875_s0, 256  ;;  %p490_p4 = scmp.lt.u32.totalorder %s724_s30, %s875_s0 }
  0x1c   : > { %p487_p6 = pnand %p486_p5, %p485_p3  ;;  %p491_p10 = scmp.lt.u32.totalorder %s489_s16, %s484_s7 }
  0x1d   : > { %p493_p12 = scmp.lt.u32.totalorder %s484_s7, %s724_s30 }
  0x1e   : > { %p488_p7 = pneg %p487_p6  ;;  %p492_p13 = por %p491_p10, %p490_p4 }
  0x20   : > { %p494_p1 = por %p493_p12, %p492_p13 }
  0x22   : > { %p495_p2 = pnand %p494_p1, %p488_p7 }
  0x24   : > { %498 = shalt.err (!%p495_p2)
}
  0x25   : > { %s499_s20 = scalar_lea.vmem %s728_s4, 128  ;;  %s632_s28 = smov [#allocation3]  }
  0x26   : > { %p500_p3 = scmp.ne.s32.totalorder %s728_s4, %s499_s20  ;;  %s504_s29 = sshll.u32 %s632_s28, 4  ;;  %s505_s29 = int_to_ptr.vmem [resolvable:$false] %s504_s29 }
  0x27   : > { %s506_s3 = scalar_lea.vmem %s505_s29, 256  ;;  %p507_p9 = scmp.lt.s32.totalorder %s728_s4, %s505_s29 }
  0x28   : > { %p502_p6 = pnand %p500_p3, %p486_p5  ;;  %p508_p4 = scmp.lt.s32.totalorder %s506_s3, %s499_s20 }
  0x2a   : > { %p503_p11 = pneg %p502_p6  ;;  %p509_p10 = por %p508_p4, %p507_p9 }
  0x2c   : > { %p510_p12 = pnand %p509_p10, %p503_p11 }
  0x2e   : > { %513 = shalt.err (!%p510_p12)
}
  0x2f   : > { %416 = dma.hbm_to_vmem [thread:$0]  (!%p732_p0), %s724_s30, 128, %s728_s4, %s134_s6  }
  0x30   : > { %p885_p1 = scmp.lt.s32.totalorder %s630_s14, 3  ;;  %p886_p2 = scmp.ge.s32.totalorder %s630_s14, 1 }
  0x31   : > { %s777_s16 = scalar_lea.hbm %s876_s1, %s394_s27  ;;  %s156_s18 = scalar_lea.vmem [#allocation6], %s393_s26 }
  0x32   : > { %p768_p7 = pnand %p886_p2, %p885_p1  ;;  %s164_s19 = sshll.u32 %s156_s18, 4  ;;  %s165_s19 = int_to_ptr.vmem [resolvable:$true] %s164_s19 }
  0x33   : > { %s153_s30 = scalar_lea.sflag [#allocation7], %s715_s25  ;;  %s514_s4 = scalar_lea.hbm %s777_s16, 128 }
  0x34   : > { %s887_s7 = scalar_select %p768_p7, 1, 0 }
  0x35   : > { %p515_p9 = scmp.ne.s32.totalorder %s777_s16, %s514_s4  ;;  %s519_s27 = scalar_lea.hbm %s876_s1, 256 }
  0x36   : > { %p520_p3 = scmp.lt.u32.totalorder %s777_s16, %s876_s1  ;;  %p521_p6 = scmp.lt.u32.totalorder %s519_s27, %s514_s4 }
  0x37   : > { %p517_p11 = pnand %p515_p9, %p486_p5  ;;  %p523_p10 = scmp.lt.u32.totalorder %s514_s4, %s777_s16 }
  0x38   : > { %p522_p4 = por %p521_p6, %p520_p3 }
  0x39   : > { %p518_p13 = pneg %p517_p11 }
  0x3a   : > { %p524_p12 = por %p523_p10, %p522_p4 }
  0x3c   : > { %p525_p1 = pnand %p524_p12, %p518_p13 }
  0x3e   : > { %528 = shalt.err (!%p525_p1)
}
  0x3f   : > { %s529_s25 = scalar_lea.vmem %s165_s19, 128  ;;  %s633_s26 = smov [#allocation6]  }
  0x40   : > { %p530_p2 = scmp.ne.s32.totalorder %s165_s19, %s529_s25  ;;  %s534_s3 = sshll.u32 %s633_s26, 4  ;;  %s535_s3 = int_to_ptr.vmem [resolvable:$false] %s534_s3 }
  0x41   : > { %s536_s8 = scalar_lea.vmem %s535_s3, 256  ;;  %p537_p8 = scmp.lt.s32.totalorder %s165_s19, %s535_s3 }
  0x42   : > { %p532_p9 = pnand %p530_p2, %p486_p5  ;;  %p538_p7 = scmp.lt.s32.totalorder %s536_s8, %s529_s25 }
  0x44   : > { %p533_p11 = pneg %p532_p9  ;;  %p539_p3 = por %p538_p7, %p537_p8 }
  0x46   : > { %p540_p6 = pnand %p539_p3, %p533_p11 }
  0x48   : > { %543 = shalt.err (!%p540_p6)
}
  0x49   : > { %419 = dma.hbm_to_vmem [thread:$0]  (!%p732_p0), %s777_s16, 128, %s165_s19, %s153_s30  }
  0x4a   : > { %p888_p13 = scmp.ne.s32.totalorder %s887_s7, 0 }
  0x4b   : > { %s804_s15 = sand.u32 (!%p888_p13), 1, %s614_s10   ;;  %p889_p8 = scmp.ne.s32.totalorder (!%p888_p13), %s881_s21, 0 }
  0x4c   : > { %173 = sbr.rel (%p888_p13) target bundleno = 804 (0x324), region = 28  ;;  %s807_s18 = sshll.u32 (!%p888_p13), %s804_s15, 3 }
  0x4d   : > { %s176_s4 = scalar_lea.sflag (!%p888_p13), [#allocation4], %s804_s15  ;;  %s179_s6 = scalar_lea.vmem (!%p888_p13), [#allocation3], %s807_s18 }
  0x53   : > { %597 = dma.done.wait (%p889_p8), %s176_s4, 128  }
  0x54   : > { %599 = vsyncadd (%p889_p8), %s176_s4, 4294967168  ;;  %s185_s5 = scalar_lea.sflag [#allocation7], %s804_s15  ;;  %s188_s7 = scalar_lea.vmem [#allocation6], %s807_s18 }
  0x55   : > { %601 = dma.done.wait (%p889_p8), %s185_s5, 128  }
  0x56   : > { %603 = vsyncadd (%p889_p8), %s185_s5, 4294967168  ;;  %v221_v0 = vld [vmem:[%s179_s6] sm:$0xff]  ;;  %v222_v19 = vld [vmem:[%s188_s7] sm:$0xff]  ;;  %s213_s21 = scalar_lea.vmem [#allocation8], %s807_s18  ;;  %s402_s19 = sshll.u32 %s622_s12, 7 }
  0x57   : > { %v223_v1 = vmul.f32 %v221_v0, %v221_v0  ;;  %v249_v22 = vsub.f32 1.0, %v222_v19  ;;  %s286_s16 = sshll.u32 %s213_s21, 4  ;;  %s826_s29 = scalar_lea.hbm %s877_s2, %s402_s19  ;;  %s828_s16 = int_to_ptr.vmem [resolvable:$true] %s286_s16 }
  0x58   : > { %s273_s25 = scalar_lea.sflag [#allocation5], %s804_s15  ;;  %s544_s26 = scalar_lea.vmem %s828_s16, 128 }
  0x59   : > { %224 = vadd.xlane.f32.xlu0 %v223_v1  ;;  %p545_p0 = scmp.ne.s32.totalorder %s828_s16, %s544_s26  ;;  %p890_p5 = scmp.ne.s32.totalorder %s882_s22, 0 }
  0x5a   : > { %s634_s12 = smov [#allocation8]  }
  0x5b   : > { %p546_p7 = pnand %p545_p0, %p890_p5  ;;  %s548_s3 = sshll.u32 %s634_s12, 4  ;;  %s549_s3 = int_to_ptr.vmem [resolvable:$false] %s548_s3 }
  0x5c   : > { %s550_s8 = scalar_lea.vmem %s549_s3, 256  ;;  %p551_p10 = scmp.lt.s32.totalorder %s828_s16, %s549_s3 }
  0x5d   : > { %p547_p4 = pneg %p546_p7  ;;  %p552_p12 = scmp.lt.s32.totalorder %s550_s8, %s544_s26 }
  0x5f   : > { %p553_p1 = por %p552_p12, %p551_p10 }
  0x61   : > { %p554_p2 = pnand %p553_p1, %p547_p4 }
  0xe6   : > { %v225_v2 = vpop.xlane.xlu0 %224 }
  0xe7   : > { %v226_v3 = vmax.f32 %v225_v2, 1e-24 }
  0xe9   : > { %474 = vrsqrt.f32 %v226_v3 }
  0xf3   : > { %v475_v4 = vpop.eup %474 }
  0xf4   : > { %v228_v5 = vmul.f32 100.0, %v475_v4 }
  0xf6   : > { %v229_v6 = vmul.f32 %v228_v5, %v221_v0 }
  0xf8   : > { %230 = vmax.xlane.f32.xlu0 %v229_v6 }
 0x185   : > { %v231_v7 = vpop.xlane.xlu0 %230 }
 0x186   : > { %v232_v8 = vsub.f32 %v229_v6, %v231_v7 }
 0x188   : > { %v233_v9 = vmul.f32 1.442695, %v232_v8 }
 0x18a   : > { %476 = vpow2.f32 %v233_v9 }
 0x194   : > { %v477_v10 = vpop.eup %476 }
 0x195   : > { %235 = vadd.xlane.f32.xlu1 %v477_v10 }
 0x222   : > { %v236_v11 = vpop.xlane.xlu1 %235 }
 0x223   : > { %478 = vrcp.f32 %v236_v11 }
 0x224   : > { %480 = vlog2.f32 %v236_v11 }
 0x22d   : > { %v479_v12 = vpop.eup %478 }
 0x22e   : > { %v239_v13 = vmul.f32 %v479_v12, %v477_v10  ;;  %v481_v15 = vpop.eup %480 }
 0x22f   : > { %v241_v16 = vmul.f32 0.6931472, %v481_v15 }
 0x230   : > { %v244_v14 = vsub.f32 1.0, %v239_v13 }
 0x231   : > { %v242_v17 = vsub.f32 %v232_v8, %v241_v16 }
 0x232   : > { %482 = vlog2.f32 %v244_v14 }
 0x233   : > { %v243_v20 = vmax.f32 %v242_v17, -100.0 }
 0x235   : > { %v248_v24 = vmul.f32 %v243_v20, %v222_v19 }
 0x23c   : > { %v483_v18 = vpop.eup %482 }
 0x23d   : > { %v246_v21 = vmul.f32 0.6931472, %v483_v18 }
 0x23f   : > { %v247_v23 = vmax.f32 %v246_v21, -100.0 }
 0x241   : > { %v250_v25 = vmul.f32 %v249_v22, %v247_v23 }
 0x243   : > { %v251_v26 = vadd.f32 %v250_v25, %v248_v24 }
 0x245   : > { %v252_v27 = vsub.f32 0.0, %v251_v26 }
 0x247   : > { %260 = vadd.xlane.f32.xlu1 %v252_v27 }
 0x2d4   : > { %v261_v28 = vpop.xlane.xlu1 %260 }
 0x2d5   : > { %v262_v29 = vrot.slane %v261_v28, 4 }
 0x2d7   : > { %v263_v30 = vadd.f32 %v262_v29, %v261_v28 }
 0x2d9   : > { %v264_v31 = vrot.slane %v263_v30, 2 }
 0x2db   : > { %v265_v32 = vadd.f32 %v264_v31, %v263_v30 }
 0x2dd   : > { %v266_v33 = vrot.slane %v265_v32, 1 }
 0x2df   : > { %v267_v34 = vadd.f32 %v266_v33, %v265_v32 }
 0x2e1   : > { %405 = vpush %v267_v34 }
 0x312   : > { %s406_s30 = spop %405 }
 0x313   : > { %s269_s20 = smul.f32 0.00048828125, %s406_s30 }
 0x315   : > { %v270_v35 = vstv %s269_s20 }
 0x316   : > { %271 = vst [vmem:[%s213_s21] sm:$0xff] %v270_v35 }
 0x317   : > { %557 = shalt.err (!%p554_p2)
}
 0x318   : > { %s558_s15 = scalar_lea.hbm %s826_s29, 128  ;;  %s562_s6 = scalar_lea.hbm %s877_s2, 256 }
 0x319   : > { %p559_p9 = scmp.ne.s32.totalorder %s826_s29, %s558_s15  ;;  %p563_p6 = scmp.lt.u32.totalorder %s826_s29, %s877_s2 }
 0x31a   : > { %p564_p13 = scmp.lt.u32.totalorder %s562_s6, %s558_s15  ;;  %p566_p0 = scmp.lt.u32.totalorder %s558_s15, %s826_s29 }
 0x31b   : > { %p560_p11 = pnand %p559_p9, %p890_p5 }
 0x31c   : > { %p565_p8 = por %p564_p13, %p563_p6 }
 0x31d   : > { %p561_p3 = pneg %p560_p11 }
 0x31e   : > { %p567_p7 = por %p566_p0, %p565_p8 }
 0x320   : > { %p568_p4 = pnand %p567_p7, %p561_p3 }
 0x322   : > { %571 = shalt.err (!%p568_p4)
}
 0x323   : > { %411 = dma.vmem_to_hbm [thread:$0]  (%p890_p5), %s828_s16, 128, %s826_s29, %s273_s25  }
 0x324 PF: > { %s298_s21 = sand.u32 1, %s610_s9   ;;  %p891_p10 = scmp.ne.s32.totalorder %s883_s24, 0 }
 0x325   : > { %p892_p12 = scmp.ge.s32.totalorder %s630_s14, 2  ;;  %s299_s19 = scalar_lea.sflag [#allocation5], %s298_s21 }
 0x327   : > { %p421_p1 = pnand %p892_p12, %p891_p10 }
 0x329   : > { %605 = dma.done.wait (!%p421_p1), %s299_s19, 128  }
 0x32a   : > { %607 = vsyncadd (!%p421_p1), %s299_s19, 4294967168  ;;  %s21_s14 = sadd.s32 1, %s630_s14   ;;  %s893_s9 = smov %s614_s10 }
 0x32b   : > { %p18_p2 = scmp.ge.s32.totalorder %s21_s14, 4   ;;  %s894_s10 = smov %s618_s11 }
 0x32c   : > { %s895_s11 = smov %s706_s23  ;;  %s896_s12 = smov %s626_s13 }
 0x32d   : > { %s897_s13 = smov %s899_s17  ;;  %20 = sbr.rel (!%p18_p2) target bundleno = 8 (0x8), region = 94 }
 0x334   :  { %304 = vsyncpa [#allocation4], 1 }
 0x335   :  { %306 = vsyncpa [#allocation4 + $0x1], 1 }
 0x336   :  { %307 = vsyncpa [#allocation7], 1 }
 0x337   :  { %309 = vsyncpa [#allocation7 + $0x1], 1 }
 0x338   :  { %310 = vsyncpa [#allocation5], 1 }
 0x339   :  { %312 = vsyncpa [#allocation5 + $0x1], 1 }

</bundles_post_ra>
